<compile_context>
chip_gen: v5e
topology: v5e:2x2
jax: 0.10.0
libtpu: 0.0.40
codegen_flags: <defaults>
</compile_context>

<pallas_src>
from math import comb

import jax
import jax.numpy as jnp
from jax.experimental import pallas as pl
from jax.experimental.pallas import tpu as pltpu

DIM = 6
ORDER = 2
# num_c = number of multi-indices of total degree <= ORDER in DIM variables (dp.order_mat_fun)
NUM_C = comb(DIM + ORDER, ORDER)  # = 28

HIDDEN = (64, 128, 128, 128, 128)
OUT_PAD = 32  # padded output width (>= NUM_C); 32 f32 lanes -> 4x less HBM write than 128


def _round_up(x, m):
    return ((x + m - 1) // m) * m


def _mlp_kernel(x_ref,
                w1_ref, b1_ref, w2_ref, b2_ref, w3_ref, b3_ref,
                w4_ref, b4_ref, w5_ref, b5_ref, w6_ref, b6_ref,
                o_ref):
    """Fused 6-layer MLP forward for one batch tile.

    x and weights are bf16 (MXU-native), biases f32. Every matmul accumulates in
    f32 via preferred_element_type; bias add + ReLU stay f32 (v5e has no native
    bf16 VPU path); activations are re-cast to bf16 before the next dot to keep
    MXU inputs narrow. The final (bt, OUT_PAD) f32 store spans the full last axis.
    """

    def layer(h_bf16, w_ref, b_ref, relu=True):
        acc = jnp.dot(h_bf16, w_ref[...], preferred_element_type=jnp.float32)
        acc = acc + b_ref[...]
        if relu:
            acc = jnp.maximum(acc, 0.0)
        return acc

    h = x_ref[...]  # already bf16 (cast in wrapper)
    h = layer(h, w1_ref, b1_ref).astype(jnp.bfloat16)
    h = layer(h, w2_ref, b2_ref).astype(jnp.bfloat16)
    h = layer(h, w3_ref, b3_ref).astype(jnp.bfloat16)
    h = layer(h, w4_ref, b4_ref).astype(jnp.bfloat16)
    h = layer(h, w5_ref, b5_ref).astype(jnp.bfloat16)
    c = layer(h, w6_ref, b6_ref, relu=False)   # (bt, OUT_PAD) f32
    o_ref[...] = c.astype(o_ref.dtype)


def net_c_forward(x, params, *, batch_tile=1024):
    """x: [B, DIM] float32. params: list of (W [in,out], b [1,out] or [out]) f32.

    Returns [B, NUM_C] float32.
    """
    B, d = x.shape
    assert d == DIM

    # --- batch tile selection ---------------------------------------------
    # Default 1024: per-step compute (~0.6 us of MXU work) comfortably exceeds the
    # ~0.35 us grid-step overhead. Clamp to the padded batch for small inputs, and
    # cap at ~B/2 so there are always >= 2 grid steps (v7x megacore sharding) when
    # the batch allows it. Always a multiple of 8.
    bt = max(8, _round_up(int(batch_tile), 8))
    b_ceil = _round_up(B, 8)
    bt = min(bt, b_ceil)
    if b_ceil >= 16:
        bt = min(bt, _round_up((B + 1) // 2, 8))
    B_pad = _round_up(B, bt)

    # Input: zero-pad batch and cast to bf16 once in the wrapper (halves HBM read).
    x_pad = x if B_pad == B else jnp.pad(x, ((0, B_pad - B), (0, 0)))
    x_pad = x_pad.astype(jnp.bfloat16)

    # --- params: weights bf16 (MXU-native), biases f32, last layer padded to OUT_PAD
    n_layers = len(params)
    flat_params = []
    param_shapes = []
    for li, (w, b) in enumerate(params):
        w = jnp.asarray(w)
        b = jnp.asarray(b).reshape(1, -1)
        if li == n_layers - 1:
            pad = OUT_PAD - w.shape[1]
            w = jnp.pad(w, ((0, 0), (0, pad)))
            b = jnp.pad(b, ((0, 0), (0, pad)))
        w = w.astype(jnp.bfloat16)
        b = b.astype(jnp.float32)
        flat_params.extend([w, b])
        param_shapes.extend([w.shape, b.shape])

    grid = (B_pad // bt,)

    # --- VMEM budget (explicit so v5e's 16 MiB default scoped VMEM is never a surprise)
    param_bytes = sum(int(p.size) * p.dtype.itemsize for p in flat_params)
    io_bytes = 2 * bt * DIM * 2 + 2 * bt * OUT_PAD * 4        # double-buffered x / out tiles
    act_bytes = 4 * bt * 128 * 4                              # a few f32 widest-layer temps
    vmem_limit = int(min(64 << 20,
                         _round_up(2 * param_bytes + io_bytes + act_bytes + (4 << 20), 1 << 20)))

    # Advisory cost estimate for XLA scheduling around the custom call.
    dims = [DIM, *HIDDEN, OUT_PAD]
    macs_per_row = sum(a * b for a, b in zip(dims[:-1], dims[1:]))
    cost = pl.CostEstimate(
        flops=2 * B_pad * macs_per_row,
        transcendentals=0,
        bytes_accessed=B_pad * (DIM * 2 + OUT_PAD * 4) + param_bytes,
    )

    def _weight_specs(single_buffer):
        specs = []
        for shp in param_shapes:
            if single_buffer:
                # Constant (0,0) index_map -> block fetched once; single-buffer it to
                # halve its VMEM footprint and skip per-step re-fetch bookkeeping.
                specs.append(pl.BlockSpec(shp, lambda i: (0, 0),
                                          pipeline_mode=pl.Buffered(1)))
            else:
                specs.append(pl.BlockSpec(shp, lambda i: (0, 0)))
        return specs

    def _call(single_buffer_weights):
        in_specs = ([pl.BlockSpec((bt, DIM), lambda i: (i, 0))]
                    + _weight_specs(single_buffer_weights))
        return pl.pallas_call(
            _mlp_kernel,
            out_shape=jax.ShapeDtypeStruct((B_pad, OUT_PAD), jnp.float32),
            grid_spec=pltpu.PrefetchScalarGridSpec(
                num_scalar_prefetch=0,
                grid=grid,
                in_specs=in_specs,
                out_specs=pl.BlockSpec((bt, OUT_PAD), lambda i: (i, 0)),
            ),
            compiler_params=pltpu.CompilerParams(
                dimension_semantics=("parallel",),
                vmem_limit_bytes=vmem_limit,
            ),
            cost_estimate=cost,
        )(x_pad, *flat_params)

    try:
        out = _call(True)
    except Exception:
        # TODO(synk): fallback for Pallas versions without pipeline_mode=pl.Buffered support.
        out = _call(False)

    return out[:B, :NUM_C]


def init_params(key):
    """Deterministic init mirroring nn.Linear shapes (weights stored [in, out])."""
    sizes = [DIM, *HIDDEN, NUM_C]
    params = []
    for i in range(len(sizes) - 1):
        fan_in, fan_out = sizes[i], sizes[i + 1]
        key, kw, kb = jax.random.split(key, 3)
        bound = 1.0 / jnp.sqrt(fan_in)
        w = jax.random.uniform(kw, (fan_in, fan_out), jnp.float32, -bound, bound)
        b = jax.random.uniform(kb, (1, fan_out), jnp.float32, -bound, bound)
        params.append((w, b))
    return params


def net_c_reference(x, params):
    h = x
    for i, (w, b) in enumerate(params):
        h = h @ w + b
        if i < len(params) - 1:
            h = jnp.maximum(h, 0.0)
    return h


def _check(B, x, params):
    out = jax.block_until_ready(net_c_forward(x, params))
    ref = net_c_reference(x, params)
    assert out.shape == (B, NUM_C), out.shape
    # bf16 matmul inputs with f32 accumulation -> compare with a relative tolerance.
    err = float(jnp.max(jnp.abs(out - ref)))
    scale = float(jnp.max(jnp.abs(ref))) + 1e-6
    assert err / scale < 5e-2, (B, err, scale)


if __name__ == "__main__":
    key = jax.random.PRNGKey(0)
    kx1, kx2, kp = jax.random.split(key, 3)
    params = init_params(kp)

    # Small demo batch (single-tile-ish path).
    B1 = 16
    x1 = jax.random.normal(kx1, (B1, DIM), jnp.float32)
    _check(B1, x1, params)

    # Odd-sized batch: exercises batch padding and a multi-step grid.
    B2 = 300
    x2 = jax.random.normal(kx2, (B2, DIM), jnp.float32)
    _check(B2, x2, params)

    print("KERNEL_OK")
</pallas_src>

<mosaic_0001>
module attributes {stable_mosaic.version = 11 : i64} {
  func.func @_mlp_kernel(%arg0: i32, %arg1: memref<8x6xbf16, #tpu.memory_space<vmem>>, %arg2: memref<6x64xbf16, #tpu.memory_space<vmem>>, %arg3: memref<1x64xf32, #tpu.memory_space<vmem>>, %arg4: memref<64x128xbf16, #tpu.memory_space<vmem>>, %arg5: memref<1x128xf32, #tpu.memory_space<vmem>>, %arg6: memref<128x128xbf16, #tpu.memory_space<vmem>>, %arg7: memref<1x128xf32, #tpu.memory_space<vmem>>, %arg8: memref<128x128xbf16, #tpu.memory_space<vmem>>, %arg9: memref<1x128xf32, #tpu.memory_space<vmem>>, %arg10: memref<128x128xbf16, #tpu.memory_space<vmem>>, %arg11: memref<1x128xf32, #tpu.memory_space<vmem>>, %arg12: memref<128x32xbf16, #tpu.memory_space<vmem>>, %arg13: memref<1x32xf32, #tpu.memory_space<vmem>>, %arg14: memref<8x32xf32, #tpu.memory_space<vmem>>) attributes {dimension_semantics = [#tpu.dimension_semantics<parallel>], iteration_bounds = array<i64: 2>, scalar_prefetch = 0 : i64, scratch_operands = 0 : i64, tpu.core_type = #tpu.core_type<tc>, window_params = [{transform_indices = @transform_0, window_bounds = array<i64: 8, 6>}, {pipeline_mode = #tpu.pipeline_mode<synchronous>, transform_indices = @transform_1, window_bounds = array<i64: 6, 64>}, {pipeline_mode = #tpu.pipeline_mode<synchronous>, transform_indices = @transform_2, window_bounds = array<i64: 1, 64>}, {pipeline_mode = #tpu.pipeline_mode<synchronous>, transform_indices = @transform_3, window_bounds = array<i64: 64, 128>}, {pipeline_mode = #tpu.pipeline_mode<synchronous>, transform_indices = @transform_4, window_bounds = array<i64: 1, 128>}, {pipeline_mode = #tpu.pipeline_mode<synchronous>, transform_indices = @transform_5, window_bounds = array<i64: 128, 128>}, {pipeline_mode = #tpu.pipeline_mode<synchronous>, transform_indices = @transform_6, window_bounds = array<i64: 1, 128>}, {pipeline_mode = #tpu.pipeline_mode<synchronous>, transform_indices = @transform_7, window_bounds = array<i64: 128, 128>}, {pipeline_mode = #tpu.pipeline_mode<synchronous>, transform_indices = @transform_8, window_bounds = array<i64: 1, 128>}, {pipeline_mode = #tpu.pipeline_mode<synchronous>, transform_indices = @transform_9, window_bounds = array<i64: 128, 128>}, {pipeline_mode = #tpu.pipeline_mode<synchronous>, transform_indices = @transform_10, window_bounds = array<i64: 1, 128>}, {pipeline_mode = #tpu.pipeline_mode<synchronous>, transform_indices = @transform_11, window_bounds = array<i64: 128, 32>}, {pipeline_mode = #tpu.pipeline_mode<synchronous>, transform_indices = @transform_12, window_bounds = array<i64: 1, 32>}, {transform_indices = @transform_13, window_bounds = array<i64: 8, 32>}]} {
    %c0 = arith.constant 0 : index
    %c0_0 = arith.constant 0 : index
    %0 = vector.load %arg1[%c0, %c0_0] : memref<8x6xbf16, #tpu.memory_space<vmem>>, vector<8x6xbf16>
    %c0_1 = arith.constant 0 : index
    %c0_2 = arith.constant 0 : index
    %1 = vector.load %arg2[%c0_1, %c0_2] : memref<6x64xbf16, #tpu.memory_space<vmem>>, vector<6x64xbf16>
    %cst = arith.constant dense<0.000000e+00> : vector<8x64xf32>
    %2 = tpu.matmul %0, %1, %cst {dimension_numbers = #tpu.dot_dimension_numbers<[1], [0], [0], [1], [0, 0, 1, 1], [], []>} : vector<8x6xbf16>, vector<6x64xbf16>, vector<8x64xf32> -> vector<8x64xf32>
    %c0_3 = arith.constant 0 : index
    %c0_4 = arith.constant 0 : index
    %3 = vector.load %arg3[%c0_3, %c0_4] : memref<1x64xf32, #tpu.memory_space<vmem>>, vector<1x64xf32>
    %4 = vector.broadcast %3 : vector<1x64xf32> to vector<8x64xf32>
    %5 = arith.addf %2, %4 : vector<8x64xf32>
    %cst_5 = arith.constant 0.000000e+00 : f32
    %6 = vector.broadcast %cst_5 : f32 to vector<8x64xf32>
    %7 = arith.maximumf %5, %6 : vector<8x64xf32>
    %8 = arith.truncf %7 : vector<8x64xf32> to vector<8x64xbf16>
    %c0_6 = arith.constant 0 : index
    %c0_7 = arith.constant 0 : index
    %9 = vector.load %arg4[%c0_6, %c0_7] : memref<64x128xbf16, #tpu.memory_space<vmem>>, vector<64x128xbf16>
    %cst_8 = arith.constant dense<0.000000e+00> : vector<8x128xf32>
    %10 = tpu.matmul %8, %9, %cst_8 {dimension_numbers = #tpu.dot_dimension_numbers<[1], [0], [0], [1], [0, 0, 1, 1], [], []>} : vector<8x64xbf16>, vector<64x128xbf16>, vector<8x128xf32> -> vector<8x128xf32>
    %c0_9 = arith.constant 0 : index
    %c0_10 = arith.constant 0 : index
    %11 = vector.load %arg5[%c0_9, %c0_10] : memref<1x128xf32, #tpu.memory_space<vmem>>, vector<1x128xf32>
    %12 = vector.broadcast %11 : vector<1x128xf32> to vector<8x128xf32>
    %13 = arith.addf %10, %12 : vector<8x128xf32>
    %cst_11 = arith.constant 0.000000e+00 : f32
    %14 = vector.broadcast %cst_11 : f32 to vector<8x128xf32>
    %15 = arith.maximumf %13, %14 : vector<8x128xf32>
    %16 = arith.truncf %15 : vector<8x128xf32> to vector<8x128xbf16>
    %c0_12 = arith.constant 0 : index
    %c0_13 = arith.constant 0 : index
    %17 = vector.load %arg6[%c0_12, %c0_13] : memref<128x128xbf16, #tpu.memory_space<vmem>>, vector<128x128xbf16>
    %cst_14 = arith.constant dense<0.000000e+00> : vector<8x128xf32>
    %18 = tpu.matmul %16, %17, %cst_14 {dimension_numbers = #tpu.dot_dimension_numbers<[1], [0], [0], [1], [0, 0, 1, 1], [], []>} : vector<8x128xbf16>, vector<128x128xbf16>, vector<8x128xf32> -> vector<8x128xf32>
    %c0_15 = arith.constant 0 : index
    %c0_16 = arith.constant 0 : index
    %19 = vector.load %arg7[%c0_15, %c0_16] : memref<1x128xf32, #tpu.memory_space<vmem>>, vector<1x128xf32>
    %20 = vector.broadcast %19 : vector<1x128xf32> to vector<8x128xf32>
    %21 = arith.addf %18, %20 : vector<8x128xf32>
    %cst_17 = arith.constant 0.000000e+00 : f32
    %22 = vector.broadcast %cst_17 : f32 to vector<8x128xf32>
    %23 = arith.maximumf %21, %22 : vector<8x128xf32>
    %24 = arith.truncf %23 : vector<8x128xf32> to vector<8x128xbf16>
    %c0_18 = arith.constant 0 : index
    %c0_19 = arith.constant 0 : index
    %25 = vector.load %arg8[%c0_18, %c0_19] : memref<128x128xbf16, #tpu.memory_space<vmem>>, vector<128x128xbf16>
    %cst_20 = arith.constant dense<0.000000e+00> : vector<8x128xf32>
    %26 = tpu.matmul %24, %25, %cst_20 {dimension_numbers = #tpu.dot_dimension_numbers<[1], [0], [0], [1], [0, 0, 1, 1], [], []>} : vector<8x128xbf16>, vector<128x128xbf16>, vector<8x128xf32> -> vector<8x128xf32>
    %c0_21 = arith.constant 0 : index
    %c0_22 = arith.constant 0 : index
    %27 = vector.load %arg9[%c0_21, %c0_22] : memref<1x128xf32, #tpu.memory_space<vmem>>, vector<1x128xf32>
    %28 = vector.broadcast %27 : vector<1x128xf32> to vector<8x128xf32>
    %29 = arith.addf %26, %28 : vector<8x128xf32>
    %cst_23 = arith.constant 0.000000e+00 : f32
    %30 = vector.broadcast %cst_23 : f32 to vector<8x128xf32>
    %31 = arith.maximumf %29, %30 : vector<8x128xf32>
    %32 = arith.truncf %31 : vector<8x128xf32> to vector<8x128xbf16>
    %c0_24 = arith.constant 0 : index
    %c0_25 = arith.constant 0 : index
    %33 = vector.load %arg10[%c0_24, %c0_25] : memref<128x128xbf16, #tpu.memory_space<vmem>>, vector<128x128xbf16>
    %cst_26 = arith.constant dense<0.000000e+00> : vector<8x128xf32>
    %34 = tpu.matmul %32, %33, %cst_26 {dimension_numbers = #tpu.dot_dimension_numbers<[1], [0], [0], [1], [0, 0, 1, 1], [], []>} : vector<8x128xbf16>, vector<128x128xbf16>, vector<8x128xf32> -> vector<8x128xf32>
    %c0_27 = arith.constant 0 : index
    %c0_28 = arith.constant 0 : index
    %35 = vector.load %arg11[%c0_27, %c0_28] : memref<1x128xf32, #tpu.memory_space<vmem>>, vector<1x128xf32>
    %36 = vector.broadcast %35 : vector<1x128xf32> to vector<8x128xf32>
    %37 = arith.addf %34, %36 : vector<8x128xf32>
    %cst_29 = arith.constant 0.000000e+00 : f32
    %38 = vector.broadcast %cst_29 : f32 to vector<8x128xf32>
    %39 = arith.maximumf %37, %38 : vector<8x128xf32>
    %40 = arith.truncf %39 : vector<8x128xf32> to vector<8x128xbf16>
    %c0_30 = arith.constant 0 : index
    %c0_31 = arith.constant 0 : index
    %41 = vector.load %arg12[%c0_30, %c0_31] : memref<128x32xbf16, #tpu.memory_space<vmem>>, vector<128x32xbf16>
    %cst_32 = arith.constant dense<0.000000e+00> : vector<8x32xf32>
    %42 = tpu.matmul %40, %41, %cst_32 {dimension_numbers = #tpu.dot_dimension_numbers<[1], [0], [0], [1], [0, 0, 1, 1], [], []>} : vector<8x128xbf16>, vector<128x32xbf16>, vector<8x32xf32> -> vector<8x32xf32>
    %c0_33 = arith.constant 0 : index
    %c0_34 = arith.constant 0 : index
    %43 = vector.load %arg13[%c0_33, %c0_34] : memref<1x32xf32, #tpu.memory_space<vmem>>, vector<1x32xf32>
    %44 = vector.broadcast %43 : vector<1x32xf32> to vector<8x32xf32>
    %45 = arith.addf %42, %44 : vector<8x32xf32>
    %c0_35 = arith.constant 0 : index
    %c0_36 = arith.constant 0 : index
    %46 = vector.load %arg14[%c0_35, %c0_36] : memref<8x32xf32, #tpu.memory_space<vmem>>, vector<8x32xf32>
    tpu.vector_store %arg14[%c0_35, %c0_36], %45 {strides = array<i32>} : memref<8x32xf32, #tpu.memory_space<vmem>>, vector<8x32xf32>,
    return
  }
  func.func @transform_0(%arg0: i32) -> (i32, i32) {
    %c0_i32 = arith.constant 0 : i32
    %c0_i32_0 = arith.constant 0 : i32
    return %arg0, %c0_i32 : i32, i32
  }
  func.func @transform_1(%arg0: i32) -> (i32, i32) {
    %c0_i32 = arith.constant 0 : i32
    %c0_i32_0 = arith.constant 0 : i32
    %c0_i32_1 = arith.constant 0 : i32
    return %c0_i32, %c0_i32_0 : i32, i32
  }
  func.func @transform_2(%arg0: i32) -> (i32, i32) {
    %c0_i32 = arith.constant 0 : i32
    %c0_i32_0 = arith.constant 0 : i32
    %c0_i32_1 = arith.constant 0 : i32
    return %c0_i32, %c0_i32_0 : i32, i32
  }
  func.func @transform_3(%arg0: i32) -> (i32, i32) {
    %c0_i32 = arith.constant 0 : i32
    %c0_i32_0 = arith.constant 0 : i32
    %c0_i32_1 = arith.constant 0 : i32
    return %c0_i32, %c0_i32_0 : i32, i32
  }
  func.func @transform_4(%arg0: i32) -> (i32, i32) {
    %c0_i32 = arith.constant 0 : i32
    %c0_i32_0 = arith.constant 0 : i32
    %c0_i32_1 = arith.constant 0 : i32
    return %c0_i32, %c0_i32_0 : i32, i32
  }
  func.func @transform_5(%arg0: i32) -> (i32, i32) {
    %c0_i32 = arith.constant 0 : i32
    %c0_i32_0 = arith.constant 0 : i32
    %c0_i32_1 = arith.constant 0 : i32
    return %c0_i32, %c0_i32_0 : i32, i32
  }
  func.func @transform_6(%arg0: i32) -> (i32, i32) {
    %c0_i32 = arith.constant 0 : i32
    %c0_i32_0 = arith.constant 0 : i32
    %c0_i32_1 = arith.constant 0 : i32
    return %c0_i32, %c0_i32_0 : i32, i32
  }
  func.func @transform_7(%arg0: i32) -> (i32, i32) {
    %c0_i32 = arith.constant 0 : i32
    %c0_i32_0 = arith.constant 0 : i32
    %c0_i32_1 = arith.constant 0 : i32
    return %c0_i32, %c0_i32_0 : i32, i32
  }
  func.func @transform_8(%arg0: i32) -> (i32, i32) {
    %c0_i32 = arith.constant 0 : i32
    %c0_i32_0 = arith.constant 0 : i32
    %c0_i32_1 = arith.constant 0 : i32
    return %c0_i32, %c0_i32_0 : i32, i32
  }
  func.func @transform_9(%arg0: i32) -> (i32, i32) {
    %c0_i32 = arith.constant 0 : i32
    %c0_i32_0 = arith.constant 0 : i32
    %c0_i32_1 = arith.constant 0 : i32
    return %c0_i32, %c0_i32_0 : i32, i32
  }
  func.func @transform_10(%arg0: i32) -> (i32, i32) {
    %c0_i32 = arith.constant 0 : i32
    %c0_i32_0 = arith.constant 0 : i32
    %c0_i32_1 = arith.constant 0 : i32
    return %c0_i32, %c0_i32_0 : i32, i32
  }
  func.func @transform_11(%arg0: i32) -> (i32, i32) {
    %c0_i32 = arith.constant 0 : i32
    %c0_i32_0 = arith.constant 0 : i32
    %c0_i32_1 = arith.constant 0 : i32
    return %c0_i32, %c0_i32_0 : i32, i32
  }
  func.func @transform_12(%arg0: i32) -> (i32, i32) {
    %c0_i32 = arith.constant 0 : i32
    %c0_i32_0 = arith.constant 0 : i32
    %c0_i32_1 = arith.constant 0 : i32
    return %c0_i32, %c0_i32_0 : i32, i32
  }
  func.func @transform_13(%arg0: i32) -> (i32, i32) {
    %c0_i32 = arith.constant 0 : i32
    %c0_i32_0 = arith.constant 0 : i32
    return %arg0, %c0_i32 : i32, i32
  }
}

module attributes {stable_mosaic.version = 11 : i64} {
  func.func @_mlp_kernel(%arg0: i32, %arg1: memref<8x6xbf16, #tpu.memory_space<vmem>>, %arg2: memref<6x64xbf16, #tpu.memory_space<vmem>>, %arg3: memref<1x64xf32, #tpu.memory_space<vmem>>, %arg4: memref<64x128xbf16, #tpu.memory_space<vmem>>, %arg5: memref<1x128xf32, #tpu.memory_space<vmem>>, %arg6: memref<128x128xbf16, #tpu.memory_space<vmem>>, %arg7: memref<1x128xf32, #tpu.memory_space<vmem>>, %arg8: memref<128x128xbf16, #tpu.memory_space<vmem>>, %arg9: memref<1x128xf32, #tpu.memory_space<vmem>>, %arg10: memref<128x128xbf16, #tpu.memory_space<vmem>>, %arg11: memref<1x128xf32, #tpu.memory_space<vmem>>, %arg12: memref<128x32xbf16, #tpu.memory_space<vmem>>, %arg13: memref<1x32xf32, #tpu.memory_space<vmem>>, %arg14: memref<8x32xf32, #tpu.memory_space<vmem>>) attributes {dimension_semantics = [#tpu.dimension_semantics<parallel>], iteration_bounds = array<i64: 2>, scalar_prefetch = 0 : i64, scratch_operands = 0 : i64, tpu.core_type = #tpu.core_type<tc>, window_params = [{transform_indices = @transform_0, window_bounds = array<i64: 8, 6>}, {pipeline_mode = #tpu.pipeline_mode<synchronous>, transform_indices = @transform_1, window_bounds = array<i64: 6, 64>}, {pipeline_mode = #tpu.pipeline_mode<synchronous>, transform_indices = @transform_2, window_bounds = array<i64: 1, 64>}, {pipeline_mode = #tpu.pipeline_mode<synchronous>, transform_indices = @transform_3, window_bounds = array<i64: 64, 128>}, {pipeline_mode = #tpu.pipeline_mode<synchronous>, transform_indices = @transform_4, window_bounds = array<i64: 1, 128>}, {pipeline_mode = #tpu.pipeline_mode<synchronous>, transform_indices = @transform_5, window_bounds = array<i64: 128, 128>}, {pipeline_mode = #tpu.pipeline_mode<synchronous>, transform_indices = @transform_6, window_bounds = array<i64: 1, 128>}, {pipeline_mode = #tpu.pipeline_mode<synchronous>, transform_indices = @transform_7, window_bounds = array<i64: 128, 128>}, {pipeline_mode = #tpu.pipeline_mode<synchronous>, transform_indices = @transform_8, window_bounds = array<i64: 1, 128>}, {pipeline_mode = #tpu.pipeline_mode<synchronous>, transform_indices = @transform_9, window_bounds = array<i64: 128, 128>}, {pipeline_mode = #tpu.pipeline_mode<synchronous>, transform_indices = @transform_10, window_bounds = array<i64: 1, 128>}, {pipeline_mode = #tpu.pipeline_mode<synchronous>, transform_indices = @transform_11, window_bounds = array<i64: 128, 32>}, {pipeline_mode = #tpu.pipeline_mode<synchronous>, transform_indices = @transform_12, window_bounds = array<i64: 1, 32>}, {transform_indices = @transform_13, window_bounds = array<i64: 8, 32>}]} {
    %c0 = arith.constant 0 : index
    %c0_0 = arith.constant 0 : index
    %0 = vector.load %arg1[%c0, %c0_0] : memref<8x6xbf16, #tpu.memory_space<vmem>>, vector<8x6xbf16>
    %c0_1 = arith.constant 0 : index
    %c0_2 = arith.constant 0 : index
    %1 = vector.load %arg2[%c0_1, %c0_2] : memref<6x64xbf16, #tpu.memory_space<vmem>>, vector<6x64xbf16>
    %cst = arith.constant dense<0.000000e+00> : vector<8x64xf32>
    %2 = tpu.matmul %0, %1, %cst {dimension_numbers = #tpu.dot_dimension_numbers<[1], [0], [0], [1], [0, 0, 1, 1], [], []>} : vector<8x6xbf16>, vector<6x64xbf16>, vector<8x64xf32> -> vector<8x64xf32>
    %c0_3 = arith.constant 0 : index
    %c0_4 = arith.constant 0 : index
    %3 = vector.load %arg3[%c0_3, %c0_4] : memref<1x64xf32, #tpu.memory_space<vmem>>, vector<1x64xf32>
    %4 = vector.broadcast %3 : vector<1x64xf32> to vector<8x64xf32>
    %5 = arith.addf %2, %4 : vector<8x64xf32>
    %cst_5 = arith.constant 0.000000e+00 : f32
    %6 = vector.broadcast %cst_5 : f32 to vector<8x64xf32>
    %7 = arith.maximumf %5, %6 : vector<8x64xf32>
    %8 = arith.truncf %7 : vector<8x64xf32> to vector<8x64xbf16>
    %c0_6 = arith.constant 0 : index
    %c0_7 = arith.constant 0 : index
    %9 = vector.load %arg4[%c0_6, %c0_7] : memref<64x128xbf16, #tpu.memory_space<vmem>>, vector<64x128xbf16>
    %cst_8 = arith.constant dense<0.000000e+00> : vector<8x128xf32>
    %10 = tpu.matmul %8, %9, %cst_8 {dimension_numbers = #tpu.dot_dimension_numbers<[1], [0], [0], [1], [0, 0, 1, 1], [], []>} : vector<8x64xbf16>, vector<64x128xbf16>, vector<8x128xf32> -> vector<8x128xf32>
    %c0_9 = arith.constant 0 : index
    %c0_10 = arith.constant 0 : index
    %11 = vector.load %arg5[%c0_9, %c0_10] : memref<1x128xf32, #tpu.memory_space<vmem>>, vector<1x128xf32>
    %12 = vector.broadcast %11 : vector<1x128xf32> to vector<8x128xf32>
    %13 = arith.addf %10, %12 : vector<8x128xf32>
    %cst_11 = arith.constant 0.000000e+00 : f32
    %14 = vector.broadcast %cst_11 : f32 to vector<8x128xf32>
    %15 = arith.maximumf %13, %14 : vector<8x128xf32>
    %16 = arith.truncf %15 : vector<8x128xf32> to vector<8x128xbf16>
    %c0_12 = arith.constant 0 : index
    %c0_13 = arith.constant 0 : index
    %17 = vector.load %arg6[%c0_12, %c0_13] : memref<128x128xbf16, #tpu.memory_space<vmem>>, vector<128x128xbf16>
    %cst_14 = arith.constant dense<0.000000e+00> : vector<8x128xf32>
    %18 = tpu.matmul %16, %17, %cst_14 {dimension_numbers = #tpu.dot_dimension_numbers<[1], [0], [0], [1], [0, 0, 1, 1], [], []>} : vector<8x128xbf16>, vector<128x128xbf16>, vector<8x128xf32> -> vector<8x128xf32>
    %c0_15 = arith.constant 0 : index
    %c0_16 = arith.constant 0 : index
    %19 = vector.load %arg7[%c0_15, %c0_16] : memref<1x128xf32, #tpu.memory_space<vmem>>, vector<1x128xf32>
    %20 = vector.broadcast %19 : vector<1x128xf32> to vector<8x128xf32>
    %21 = arith.addf %18, %20 : vector<8x128xf32>
    %cst_17 = arith.constant 0.000000e+00 : f32
    %22 = vector.broadcast %cst_17 : f32 to vector<8x128xf32>
    %23 = arith.maximumf %21, %22 : vector<8x128xf32>
    %24 = arith.truncf %23 : vector<8x128xf32> to vector<8x128xbf16>
    %c0_18 = arith.constant 0 : index
    %c0_19 = arith.constant 0 : index
    %25 = vector.load %arg8[%c0_18, %c0_19] : memref<128x128xbf16, #tpu.memory_space<vmem>>, vector<128x128xbf16>
    %cst_20 = arith.constant dense<0.000000e+00> : vector<8x128xf32>
    %26 = tpu.matmul %24, %25, %cst_20 {dimension_numbers = #tpu.dot_dimension_numbers<[1], [0], [0], [1], [0, 0, 1, 1], [], []>} : vector<8x128xbf16>, vector<128x128xbf16>, vector<8x128xf32> -> vector<8x128xf32>
    %c0_21 = arith.constant 0 : index
    %c0_22 = arith.constant 0 : index
    %27 = vector.load %arg9[%c0_21, %c0_22] : memref<1x128xf32, #tpu.memory_space<vmem>>, vector<1x128xf32>
    %28 = vector.broadcast %27 : vector<1x128xf32> to vector<8x128xf32>
    %29 = arith.addf %26, %28 : vector<8x128xf32>
    %cst_23 = arith.constant 0.000000e+00 : f32
    %30 = vector.broadcast %cst_23 : f32 to vector<8x128xf32>
    %31 = arith.maximumf %29, %30 : vector<8x128xf32>
    %32 = arith.truncf %31 : vector<8x128xf32> to vector<8x128xbf16>
    %c0_24 = arith.constant 0 : index
    %c0_25 = arith.constant 0 : index
    %33 = vector.load %arg10[%c0_24, %c0_25] : memref<128x128xbf16, #tpu.memory_space<vmem>>, vector<128x128xbf16>
    %cst_26 = arith.constant dense<0.000000e+00> : vector<8x128xf32>
    %34 = tpu.matmul %32, %33, %cst_26 {dimension_numbers = #tpu.dot_dimension_numbers<[1], [0], [0], [1], [0, 0, 1, 1], [], []>} : vector<8x128xbf16>, vector<128x128xbf16>, vector<8x128xf32> -> vector<8x128xf32>
    %c0_27 = arith.constant 0 : index
    %c0_28 = arith.constant 0 : index
    %35 = vector.load %arg11[%c0_27, %c0_28] : memref<1x128xf32, #tpu.memory_space<vmem>>, vector<1x128xf32>
    %36 = vector.broadcast %35 : vector<1x128xf32> to vector<8x128xf32>
    %37 = arith.addf %34, %36 : vector<8x128xf32>
    %cst_29 = arith.constant 0.000000e+00 : f32
    %38 = vector.broadcast %cst_29 : f32 to vector<8x128xf32>
    %39 = arith.maximumf %37, %38 : vector<8x128xf32>
    %40 = arith.truncf %39 : vector<8x128xf32> to vector<8x128xbf16>
    %c0_30 = arith.constant 0 : index
    %c0_31 = arith.constant 0 : index
    %41 = vector.load %arg12[%c0_30, %c0_31] : memref<128x32xbf16, #tpu.memory_space<vmem>>, vector<128x32xbf16>
    %cst_32 = arith.constant dense<0.000000e+00> : vector<8x32xf32>
    %42 = tpu.matmul %40, %41, %cst_32 {dimension_numbers = #tpu.dot_dimension_numbers<[1], [0], [0], [1], [0, 0, 1, 1], [], []>} : vector<8x128xbf16>, vector<128x32xbf16>, vector<8x32xf32> -> vector<8x32xf32>
    %c0_33 = arith.constant 0 : index
    %c0_34 = arith.constant 0 : index
    %43 = vector.load %arg13[%c0_33, %c0_34] : memref<1x32xf32, #tpu.memory_space<vmem>>, vector<1x32xf32>
    %44 = vector.broadcast %43 : vector<1x32xf32> to vector<8x32xf32>
    %45 = arith.addf %42, %44 : vector<8x32xf32>
    %c0_35 = arith.constant 0 : index
    %c0_36 = arith.constant 0 : index
    %46 = vector.load %arg14[%c0_35, %c0_36] : memref<8x32xf32, #tpu.memory_space<vmem>>, vector<8x32xf32>
    tpu.vector_store %arg14[%c0_35, %c0_36], %45 {strides = array<i32>} : memref<8x32xf32, #tpu.memory_space<vmem>>, vector<8x32xf32>,
    return
  }
  func.func @transform_0(%arg0: i32) -> (i32, i32) {
    %c0_i32 = arith.constant 0 : i32
    %c0_i32_0 = arith.constant 0 : i32
    return %arg0, %c0_i32 : i32, i32
  }
  func.func @transform_1(%arg0: i32) -> (i32, i32) {
    %c0_i32 = arith.constant 0 : i32
    %c0_i32_0 = arith.constant 0 : i32
    %c0_i32_1 = arith.constant 0 : i32
    return %c0_i32, %c0_i32_0 : i32, i32
  }
  func.func @transform_2(%arg0: i32) -> (i32, i32) {
    %c0_i32 = arith.constant 0 : i32
    %c0_i32_0 = arith.constant 0 : i32
    %c0_i32_1 = arith.constant 0 : i32
    return %c0_i32, %c0_i32_0 : i32, i32
  }
  func.func @transform_3(%arg0: i32) -> (i32, i32) {
    %c0_i32 = arith.constant 0 : i32
    %c0_i32_0 = arith.constant 0 : i32
    %c0_i32_1 = arith.constant 0 : i32
    return %c0_i32, %c0_i32_0 : i32, i32
  }
  func.func @transform_4(%arg0: i32) -> (i32, i32) {
    %c0_i32 = arith.constant 0 : i32
    %c0_i32_0 = arith.constant 0 : i32
    %c0_i32_1 = arith.constant 0 : i32
    return %c0_i32, %c0_i32_0 : i32, i32
  }
  func.func @transform_5(%arg0: i32) -> (i32, i32) {
    %c0_i32 = arith.constant 0 : i32
    %c0_i32_0 = arith.constant 0 : i32
    %c0_i32_1 = arith.constant 0 : i32
    return %c0_i32, %c0_i32_0 : i32, i32
  }
  func.func @transform_6(%arg0: i32) -> (i32, i32) {
    %c0_i32 = arith.constant 0 : i32
    %c0_i32_0 = arith.constant 0 : i32
    %c0_i32_1 = arith.constant 0 : i32
    return %c0_i32, %c0_i32_0 : i32, i32
  }
  func.func @transform_7(%arg0: i32) -> (i32, i32) {
    %c0_i32 = arith.constant 0 : i32
    %c0_i32_0 = arith.constant 0 : i32
    %c0_i32_1 = arith.constant 0 : i32
    return %c0_i32, %c0_i32_0 : i32, i32
  }
  func.func @transform_8(%arg0: i32) -> (i32, i32) {
    %c0_i32 = arith.constant 0 : i32
    %c0_i32_0 = arith.constant 0 : i32
    %c0_i32_1 = arith.constant 0 : i32
    return %c0_i32, %c0_i32_0 : i32, i32
  }
  func.func @transform_9(%arg0: i32) -> (i32, i32) {
    %c0_i32 = arith.constant 0 : i32
    %c0_i32_0 = arith.constant 0 : i32
    %c0_i32_1 = arith.constant 0 : i32
    return %c0_i32, %c0_i32_0 : i32, i32
  }
  func.func @transform_10(%arg0: i32) -> (i32, i32) {
    %c0_i32 = arith.constant 0 : i32
    %c0_i32_0 = arith.constant 0 : i32
    %c0_i32_1 = arith.constant 0 : i32
    return %c0_i32, %c0_i32_0 : i32, i32
  }
  func.func @transform_11(%arg0: i32) -> (i32, i32) {
    %c0_i32 = arith.constant 0 : i32
    %c0_i32_0 = arith.constant 0 : i32
    %c0_i32_1 = arith.constant 0 : i32
    return %c0_i32, %c0_i32_0 : i32, i32
  }
  func.func @transform_12(%arg0: i32) -> (i32, i32) {
    %c0_i32 = arith.constant 0 : i32
    %c0_i32_0 = arith.constant 0 : i32
    %c0_i32_1 = arith.constant 0 : i32
    return %c0_i32, %c0_i32_0 : i32, i32
  }
  func.func @transform_13(%arg0: i32) -> (i32, i32) {
    %c0_i32 = arith.constant 0 : i32
    %c0_i32_0 = arith.constant 0 : i32
    return %arg0, %c0_i32 : i32, i32
  }
}

</mosaic_0001>

<bundles_post_ra>
// kernel: tpu_custom_call.1
= control target key start
LH: loop header
LB: loop body
LE: loop exit
PB: predicated region body
PF: predicated region fallthrough
CT: control target
= control target key end

     0   :  { %s1867_s0 = inlined_call_operand.vmem [shape: bf16[16,6], index: 0, kind: input, shape index: {}]   ;;  %s1868_s1 = inlined_call_operand.hbm [shape: bf16[6,64], index: 1, kind: input, shape index: {}]   ;;  %s1869_s2 = inlined_call_operand.hbm [shape: f32[1,64], index: 2, kind: input, shape index: {}]   ;;  %s1870_s3 = inlined_call_operand.vmem [shape: bf16[64,128], index: 3, kind: input, shape index: {}]   ;;  %s1871_s4 = inlined_call_operand.hbm [shape: f32[1,128], index: 4, kind: input, shape index: {}]   ;;  %s1872_s5 = inlined_call_operand.vmem [shape: bf16[128,128], index: 5, kind: input, shape index: {}]   ;;  %s1873_s6 = inlined_call_operand.vmem [shape: f32[1,128], index: 6, kind: input, shape index: {}]   ;;  %s1874_s7 = inlined_call_operand.hbm [shape: bf16[128,128], index: 7, kind: input, shape index: {}]   ;;  %s1875_s8 = inlined_call_operand.vmem [shape: f32[1,128], index: 8, kind: input, shape index: {}]   ;;  %s1876_s9 = inlined_call_operand.hbm [shape: bf16[128,128], index: 9, kind: input, shape index: {}]   ;;  %s1877_s10 = inlined_call_operand.vmem [shape: f32[1,128], index: 10, kind: input, shape index: {}]   ;;  %s1878_s11 = inlined_call_operand.vmem [shape: bf16[128,32], index: 11, kind: input, shape index: {}]   ;;  %s1879_s12 = inlined_call_operand.vmem [shape: f32[1,32], index: 12, kind: input, shape index: {}]   ;;  %s1880_s13 = inlined_call_operand.hbm [shape: f32[16,32], index: 13, kind: output, shape index: {}]  }
   0x1   :  { %1889 = sst [smem:[#allocation23_spill]] %s1869_s2 }
   0x2   :  { %1890 = sst [smem:[#allocation24_spill]] %s1874_s7 }
   0x3   :  { %18 = vsyncpa [#allocation3], 0 }
   0x4   :  { %19 = vsyncpa [#allocation6], 0 }
   0x5   :  { %20 = vsyncpa [#allocation9], 0 }
   0x6   :  { %21 = vsyncpa [#allocation4], 0 }
   0x7   :  { %23 = vsyncpa [#allocation4 + $0x1], 0  ;;  %s1658_s25 = smov 0   ;;  %s1660_s26 = smov 0  }
   0x8   :  { %s1662_s27 = smov 0   ;;  %s1664_s28 = smov 0  }
   0x9 LB: > { %1891 = sst [smem:[#allocation16_spill]] %s1567_s25  ;;  %s1679_s29 = sadd.s32 4294967295, %s1579_s28   ;;  %s1579_s28 = sphi %s1664_s28, %s1908_s28   ;;  %s1575_s27 = sphi %s1662_s27, %s1910_s27   ;;  %s1571_s26 = sphi %s1660_s26, %s1912_s26   ;;  %s1567_s25 = sphi %s1658_s25, %s1911_s25  }
   0xa   : > { %1892 = sst [smem:[#allocation17_spill]] %s1575_s27  ;;  %s1055_s30 = sadd.s32 4294967294, %s1579_s28  }
   0xb   : > { %1893 = sst [smem:[#allocation18_spill]] %s1579_s28  ;;  %s1683_s14 = sadd.s32 1, %s1579_s28  }
   0xc   : > { %1894 = sst [smem:[#allocation19_spill]] %s1683_s14  ;;  %s314_s15 = sadd.s32 1, %s1575_s27 }
   0xd   : > { %s311_s16 = ssub.s32 %s1579_s28, %s1683_s14  ;;  %p324_p0 = scmp.ne.s32.totalorder %s1575_s27, %s1571_s26 }
   0xe   : > { %p312_p1 = scmp.eq.s32.totalorder %s311_s16, 0  ;;  %p325_p2 = scmp.eq.s32.totalorder %s1679_s29, 1 }
   0xf   : > { %p330_p3 = scmp.ne.s32.totalorder %s1571_s26, %s1567_s25  ;;  %p331_p4 = scmp.eq.s32.totalorder %s1055_s30, 1 }
  0x10   : > { %s1694_s17 = scalar_select %p312_p1, %s1575_s27, %s314_s15  }
  0x11   : > { %p1696_p5 = por %p325_p2, %p324_p0  ;;  %p1700_p6 = por %p331_p4, %p330_p3 }
  0x12   : > { %1895 = sst [smem:[#allocation20_spill]] %s1694_s17  ;;  %p1056_p7 = scmp.ge.s32.totalorder %s1579_s28, 1 }
  0x13   : > { %s1896_s18 = scalar_select %p1696_p5, 1, 0 }
  0x14   : > { %s1898_s19 = scalar_select %p1700_p6, 1, 0 }
  0x15   : > { %1897 = sst [smem:[#allocation21_spill]] %s1896_s18  ;;  %p338_p8 = scmp.lt.s32.totalorder %s1579_s28, 3 }
  0x16   : > { %1899 = sst [smem:[#allocation22_spill]] %s1898_s19  ;;  %p1299_p9 = scmp.eq.s32.totalorder %s1679_s29, 0 }
  0x17   : > { %p1707_p10 = pnand %p1056_p7, %p338_p8  ;;  %s1901_s2 = sld [smem:[#allocation23_spill]] }
  0x18   : > { %s1581_s24 = smov [#allocation5]   ;;  %s1902_s7 = sld [smem:[#allocation24_spill]] }
  0x19   : > { %p1279_p11 = pneg %p1707_p10  ;;  %s364_s30 = sshll.u32 %s1581_s24, 4  ;;  %s365_s30 = int_to_ptr.vmem [resolvable:$true] %s364_s30 }
  0x1a   : > { %s1582_s21 = smov [#allocation8]   ;;  %s1583_s24 = smov 64  }
  0x1b   : > { %p1721_p12 = pnand %p1299_p9, %p1279_p11  ;;  %s396_s22 = sshll.u32 %s1582_s21, 4  ;;  %s397_s22 = int_to_ptr.vmem [resolvable:$true] %s396_s22 }
  0x1c   : > { %s1585_s14 = smov [#allocation2]   ;;  %s377_s21 = sshll.u32 %s1871_s4, 4  ;;  %s378_s21 = int_to_ptr.hbm [resolvable:$true] %s377_s21 }
  0x1d   : > { %s362_s23 = sshll.u32 %s1901_s2, 4  ;;  %s1584_s2 = smov 4   ;;  %s363_s23 = int_to_ptr.hbm [resolvable:$true] %s362_s23 }
  0x1e   : > { %s394_s17 = sshll.u32 %s1902_s7, 4  ;;  %s350_s7 = sshll.u32 %s1868_s1, 4  ;;  %s395_s17 = int_to_ptr.hbm [resolvable:$true] %s394_s17  ;;  %s351_s7 = int_to_ptr.hbm [resolvable:$true] %s350_s7 }
  0x1f   : > { %1285 = dma.hbm_to_vmem [thread:$0]  (!%p1721_p12), %s363_s23, 16, %s365_s30, [#allocation6]  }
  0x20   : > { %1291 = dma.hbm_to_vmem [thread:$0]  (!%p1721_p12), %s395_s17, 1024, %s397_s22, [#allocation9], %s1583_s24, %s1583_s24, %s1584_s2  }
  0x21   : > { %s352_s19 = sshll.u32 %s1585_s14, 4  ;;  %s1586_s23 = smov [#allocation7]   ;;  %s353_s19 = int_to_ptr.vmem [resolvable:$true] %s352_s19 }
  0x22   : > { %1282 = dma.hbm_to_vmem [thread:$0]  (!%p1721_p12), %s351_s7, 64, %s353_s19, [#allocation3]  }
  0x23   : > { %s379_s30 = sshll.u32 %s1586_s23, 4  ;;  %s411_s22 = sshll.u32 %s1876_s9, 4  ;;  %s380_s30 = int_to_ptr.vmem [resolvable:$true] %s379_s30  ;;  %s412_s22 = int_to_ptr.hbm [resolvable:$true] %s411_s22 }
  0x24   : > { %1288 = dma.hbm_to_vmem [thread:$0]  (!%p1721_p12), %s378_s21, 16, %s380_s30, [#allocation6]  }
  0x25   : > { %s1587_s15 = smov [#allocation10]   ;;  %445 = sbr.rel (%p1707_p10) target bundleno = 860 (0x35c), region = 72 }
  0x26   : > { %s413_s14 = sshll.u32 %s1587_s15, 4  ;;  %s414_s14 = int_to_ptr.vmem [resolvable:$true] %s413_s14 }
  0x27   : > { %1294 = dma.hbm_to_vmem [thread:$0]  (!%p1721_p12), %s412_s22, 1024, %s414_s14, [#allocation9], %s1583_s24, %s1583_s24, %s1584_s2  }
  0x2a   : > { %1550 = dma.done.wait (%p1299_p9), [#allocation3], 64  }
  0x2b   : > { %1552 = vsyncadd (%p1299_p9), [#allocation3], 4294967232 }
  0x2c   : > { %1554 = dma.done.wait (%p1299_p9), [#allocation6], 32  }
  0x2d   : > { %1556 = vsyncadd (%p1299_p9), [#allocation6], 4294967264 }
  0x2e   : > { %1558 = dma.done.wait (%p1299_p9), [#allocation9], 2048  }
  0x2f   : > { %1560 = vsyncadd (%p1299_p9), [#allocation9], 4294965248  ;;  %p509_p13 = scmp.lt.s32.totalorder %s1679_s29, 1  ;;  %vm524_vm0 = vcmask 1042432   ;;  %v515_v0 = vld [vmem:[#allocation2] sm:$0x7] }
  0x30   : > { %vm520_vm1 = vcmask 48128   ;;  %v1224_v1 = vld [vmem:[%s1870_s3 + $0x18] sm:$0xff]  ;;  %v526_v2 = vsel %vm524_vm0, %v515_v0, 0  ;;  %v1223_v4 = vld [vmem:[%s1870_s3 + $0x10] sm:$0xff]  ;;  %v1222_v5 = vld [vmem:[%s1870_s3 + $0x8] sm:$0xff]  ;;  %vm579_vm2 = vcmask 523264  }
  0x31   : > { %s510_s2 = scalar_select %p509_p13, %s1679_s29, 1  ;;  %535 = vmatpush.bf16.msra.mxu0 %v526_v2  ;;  %587 = vmatpush.bf16.msra.mxu1 %v1224_v1  ;;  %v1221_v6 = vld [vmem:[%s1870_s3] sm:$0xff]  ;;  %v1232_v7 = vld [vmem:[%s1872_s5 + $0x38] sm:$0xff]  ;;  %v1231_v8 = vld [vmem:[%s1872_s5 + $0x30] sm:$0xff]  ;;  %vm928_vm3 = vcmask 261120  }
  0x32   : > { %666 = vmatpush.bf16.msra.mxu2 %v1232_v7  ;;  %v1230_v9 = vld [vmem:[%s1872_s5 + $0x28] sm:$0xff]  ;;  %v1229_v10 = vld [vmem:[%s1872_s5 + $0x20] sm:$0xff]  ;;  %v1228_v11 = vld [vmem:[%s1872_s5 + $0x18] sm:$0xff]  ;;  %s1525_s14 = scalar_lea.hbm %s1880_s13, 16 }
  0x33   : > { %s1070_s7 = sshll.u32 %s510_s2, 2  ;;  %v1227_v12 = vld [vmem:[%s1872_s5 + $0x10] sm:$0xff]  ;;  %v1349_v13 = vld [vmem:[#allocation5] ss:$0 sm:$0xff]  ;;  %v1226_v19 = vld [vmem:[%s1872_s5 + $0x8] sm:$0xff]  ;;  %s506_s2 = sand.u32 1, %s1571_s26  }
  0x34   : > { %s512_s28 = scalar_lea.vmem %s1867_s0, %s1070_s7  ;;  %v1225_v20 = vld [vmem:[%s1872_s5] sm:$0xff]  ;;  %v1239_v22 = vld [vmem:[#allocation8 + $0x30] sm:$0xff]  ;;  %v1238_v23 = vld [vmem:[#allocation8 + $0x28] sm:$0xff]  ;;  %s1218_s7 = sshll.u32 %s1679_s29, 3 }
  0x35   : > { %v514_v3 = vld [vmem:[%s512_s28] sm:$0xf]  ;;  %588 = vmatpush.bf16.msra.mxu1 %v1223_v4  ;;  %v1237_v24 = vld [vmem:[#allocation8 + $0x20] sm:$0xff]  ;;  %v1235_v26 = vld [vmem:[#allocation8 + $0x10] sm:$0xff]  ;;  %s1069_s25 = sshll.u32 %s506_s2, 3  ;;  %s941_s18 = scalar_lea.hbm %s1880_s13, %s1218_s7 }
  0x36   : > { %1071 = vmatmul.msk.bf16.vlgmr.msra.gmra.mxu0 %vm520_vm1, %v514_v3  ;;  %667 = vmatpush.bf16.msra.mxu2 %v1231_v8  ;;  %v1240_v21 = vld [vmem:[#allocation8 + $0x38] sm:$0xff]  ;;  %v1234_v33 = vld [vmem:[#allocation8 + $0x8] sm:$0xff]  ;;  %v1233_v34 = vld [vmem:[#allocation8] sm:$0xff]  ;;  %s508_s16 = scalar_lea.vmem [#allocation11], %s1069_s25  ;;  %s945_s23 = sshll.u32 %s941_s18, 4  ;;  %s946_s23 = int_to_ptr.hbm [resolvable:$true] %s945_s23 }
  0x37   : > { %749 = vmatpush.bf16.msra.mxu3 %v1240_v21  ;;  %v1236_v25 = vld [vmem:[#allocation8 + $0x18] sm:$0xff]  ;;  %v1247_v36 = vld [vmem:[#allocation10 + $0x30] sm:$0xff]  ;;  %v1246_v37 = vld [vmem:[#allocation10 + $0x28] sm:$0xff]  ;;  %s943_s21 = sshll.u32 %s508_s16, 4  ;;  %s931_s29 = scalar_lea.sflag [#allocation4], %s506_s2  ;;  %s944_s21 = int_to_ptr.vmem [resolvable:$true] %s943_s21 }
  0x38   : > { %v1350_v27 = vld [vmem:[#allocation7] ss:$0 sm:$0xff]  ;;  %v1245_v38 = vld [vmem:[#allocation10 + $0x20] sm:$0xff]  ;;  %v1243_v40 = vld [vmem:[#allocation10 + $0x10] sm:$0xff]  ;;  %s1519_s30 = sshra.s32 %s946_s23, 4  ;;  %s1520_s30 = int_to_ptr.hbm [resolvable:$true] %s1519_s30 }
  0x39   : > { %589 = vmatpush.bf16.msra.mxu1 %v1222_v5  ;;  %v1248_v35 = vld [vmem:[#allocation10 + $0x38] sm:$0xff]  ;;  %v1242_v47 = vld [vmem:[#allocation10 + $0x8] sm:$0xff]  ;;  %v1241_v48 = vld [vmem:[#allocation10] sm:$0xff]  ;;  %s1521_s17 = scalar_lea.hbm %s1520_s30, 8  ;;  %p1526_p3 = scmp.lt.s32.totalorder %s1520_s30, %s1880_s13 }
  0x3a   : > { %668 = vmatpush.bf16.msra.mxu2 %v1230_v9  ;;  %832 = vmatpush.bf16.msrb.mxu0 %v1248_v35  ;;  %v1244_v39 = vld [vmem:[#allocation10 + $0x18] sm:$0xff]  ;;  %v1256_v49 = vld [vmem:[%s1878_s11 + $0x38] sm:$0xff]  ;;  %v1255_v50 = vld [vmem:[%s1878_s11 + $0x30] sm:$0xff]  ;;  %p1522_p0 = scmp.ne.s32.totalorder %s1520_s30, %s1521_s17  ;;  %p1527_p4 = scmp.lt.s32.totalorder %s1525_s14, %s1521_s17 }
  0x3b   : > { %750 = vmatpush.bf16.msra.mxu3 %v1239_v22  ;;  %v1351_v41 = vld [vmem:[%s1873_s6] ss:$0 sm:$0xff]  ;;  %v1254_v51 = vld [vmem:[%s1878_s11 + $0x28] sm:$0xff]  ;;  %v1252_v53 = vld [vmem:[%s1878_s11 + $0x18] sm:$0xff] }
  0x3c   : > { %v1253_v52 = vld [vmem:[%s1878_s11 + $0x20] sm:$0xff]  ;;  %v1251_v54 = vld [vmem:[%s1878_s11 + $0x10] sm:$0xff]  ;;  %v1250_v61 = vld [vmem:[%s1878_s11 + $0x8] sm:$0xff]  ;;  %p1523_p1 = pnand %p1522_p0, %p1696_p5  ;;  %p1528_p7 = por %p1527_p4, %p1526_p3 }
  0x3d   : > { %590 = vmatpush.bf16.msra.mxu1 %v1221_v6  ;;  %v1352_v55 = vld [vmem:[%s1875_s8] ss:$0 sm:$0xff] }
  0x3e   : > { %669 = vmatpush.bf16.msra.mxu2 %v1229_v10  ;;  %833 = vmatpush.bf16.msrb.mxu0 %v1247_v36  ;;  %v1249_v62 = vld [vmem:[%s1878_s11] sm:$0xff]  ;;  %p1524_p2 = pneg %p1523_p1 }
  0x3f   : > { %751 = vmatpush.bf16.msra.mxu3 %v1238_v23  ;;  %v1353_v63 = vld [vmem:[%s1877_s10] ss:$0 sm:$0xff] }
  0x40   : > { %v1354_v5 = vld [vmem:[%s1879_s12] ss:$0 sm:$0xff]  ;;  %p1529_p8 = pnand %p1528_p7, %p1524_p2 }
  0x41   : > { %915 = vmatpush.bf16.msrb.mxu1 %v1256_v49 }
  0x42   : > { %670 = vmatpush.bf16.msra.mxu2 %v1228_v11  ;;  %834 = vmatpush.bf16.msrb.mxu0 %v1246_v37 }
  0x43   : > { %752 = vmatpush.bf16.msra.mxu3 %v1237_v24 }
  0x45   : > { %916 = vmatpush.bf16.msrb.mxu1 %v1255_v50 }
  0x46   : > { %671 = vmatpush.bf16.msra.mxu2 %v1227_v12  ;;  %835 = vmatpush.bf16.msrb.mxu0 %v1245_v38 }
  0x47   : > { %753 = vmatpush.bf16.msra.mxu3 %v1236_v25 }
  0x49   : > { %917 = vmatpush.bf16.msrb.mxu1 %v1254_v51 }
  0x4a   : > { %672 = vmatpush.bf16.msra.mxu2 %v1226_v19  ;;  %836 = vmatpush.bf16.msrb.mxu0 %v1244_v39 }
  0x4b   : > { %754 = vmatpush.bf16.msra.mxu3 %v1235_v26 }
  0x4d   : > { %918 = vmatpush.bf16.msrb.mxu1 %v1253_v52 }
  0x4e   : > { %673 = vmatpush.bf16.msra.mxu2 %v1225_v20  ;;  %837 = vmatpush.bf16.msrb.mxu0 %v1243_v40 }
  0x4f   : > { %755 = vmatpush.bf16.msra.mxu3 %v1234_v33 }
  0x51   : > { %919 = vmatpush.bf16.msrb.mxu1 %v1252_v53 }
  0x52   : > { %838 = vmatpush.bf16.msrb.mxu0 %v1242_v47 }
  0x53   : > { %756 = vmatpush.bf16.msra.mxu3 %v1233_v34 }
  0x55   : > { %920 = vmatpush.bf16.msrb.mxu1 %v1251_v54 }
  0x56   : > { %839 = vmatpush.bf16.msrb.mxu0 %v1241_v48 }
  0x59   : > { %921 = vmatpush.bf16.msrb.mxu1 %v1250_v61 }
  0x5d   : > { %922 = vmatpush.bf16.msrb.mxu1 %v1249_v62 }
  0xb3   : > { %v537_v14 = vpop.f32.mrf.mxu0 }
  0xb4   : > { %v538_v15 = vadd.f32 %v1349_v13, %v537_v14 }
  0xb6   : > { %v541_v16 = vmax.f32 %v538_v15, 0.0 }
  0xb8   : > { %v542_v17 = vpack.c.bf16 %v541_v16, %v541_v16 }
  0xba   : > { %1088 = vmatmul.msk.bf16.vlgmr.msra.gmra.mxu1 %vm579_vm2, %v542_v17 }
  0xbb   : > { %v539_v18 = vpop.f32.mrf.mxu0 }
 0x137   : > { %v592_v28 = vpop.f32.mrf.mxu1 }
 0x138   : > { %v593_v29 = vadd.f32 %v1350_v27, %v592_v28 }
 0x13a   : > { %v596_v30 = vmax.f32 %v593_v29, 0.0 }
 0x13c   : > { %v597_v31 = vpack.c.bf16 %v596_v30, %v596_v30 }
 0x13e   : > { %674 = vmatmul.bf16.vlgmr.msra.gmra.mxu2 %v597_v31 }
 0x13f   : > { %v594_v32 = vpop.f32.mrf.mxu1 }
 0x1c1   : > { %v675_v42 = vpop.f32.mrf.mxu2 }
 0x1c2   : > { %v676_v43 = vadd.f32 %v1351_v41, %v675_v42 }
 0x1c4   : > { %v679_v44 = vmax.f32 %v676_v43, 0.0 }
 0x1c6   : > { %v680_v45 = vpack.c.bf16 %v679_v44, %v679_v44 }
 0x1c8   : > { %757 = vmatmul.bf16.vlgmr.msra.gmra.mxu3 %v680_v45 }
 0x1c9   : > { %v677_v46 = vpop.f32.mrf.mxu2 }
 0x24b   : > { %v758_v56 = vpop.f32.mrf.mxu3 }
 0x24c   : > { %v759_v57 = vadd.f32 %v1352_v55, %v758_v56 }
 0x24e   : > { %v762_v58 = vmax.f32 %v759_v57, 0.0 }
 0x250   : > { %v763_v59 = vpack.c.bf16 %v762_v58, %v762_v58 }
 0x252   : > { %840 = vmatmul.bf16.vlgmr.msrb.gmra.mxu0 %v763_v59 }
 0x253   : > { %v760_v60 = vpop.f32.mrf.mxu3 }
 0x2cf   : > { %v841_v0 = vpop.f32.mrf.mxu0 }
 0x2d0   : > { %v842_v1 = vadd.f32 %v1353_v63, %v841_v0 }
 0x2d2   : > { %v845_v2 = vmax.f32 %v842_v1, 0.0 }
 0x2d4   : > { %v846_v3 = vpack.c.bf16 %v845_v2, %v845_v2 }
 0x2d6   : > { %923 = vmatmul.bf16.vlgmr.msrb.gmra.mxu1 %v846_v3 }
 0x2d7   : > { %v843_v4 = vpop.f32.mrf.mxu0 }
 0x353   : > { %v924_v6 = vpop.f32.mrf.mxu1 }
 0x354   : > { %v925_v7 = vadd.f32 %v1354_v5, %v924_v6 }
 0x356   : > { %929 = vst.msk [vmem:[%s508_s16] sm:$0xff] %vm928_vm3, %v925_v7 }
 0x357   : > { %1532 = shalt.err (!%p1529_p8)
}
 0x358   : > { %1277 = dma.vmem_to_hbm [thread:$0]  (%p1696_p5), %s944_s21, 128, %s946_s23, %s931_s29  }
 0x35b   : > { %v926_v8 = vpop.f32.mrf.mxu1 }
 0x35c PF: > { %s1905_s2 = sld [smem:[#allocation18_spill]] }
 0x35d   : > { %s1906_s27 = sld [smem:[#allocation16_spill]] }
 0x362   : > { %p1309_p9 = scmp.ge.s32.totalorder %s1905_s2, 2 }
 0x363   : > { %s957_s18 = sand.u32 1, %s1906_s27  }
 0x364   : > { %p1296_p10 = pnand %p1309_p9, %p1700_p6  ;;  %s958_s19 = scalar_lea.sflag [#allocation4], %s957_s18 }
 0x366   : > { %p1297_p11 = pneg %p1296_p10 }
 0x368   : > { %1562 = dma.done.wait (%p1297_p11), %s958_s19, 128  }
 0x369   : > { %1564 = vsyncadd (%p1297_p11), %s958_s19, 4294967168  ;;  %s1908_s28 = sld [smem:[#allocation19_spill]]  ;;  %s1911_s25 = smov %s1571_s26 }
 0x36a   : > { %s1909_s20 = sld [smem:[#allocation17_spill]] }
 0x36b   : > { %s1910_s27 = sld [smem:[#allocation20_spill]] }
 0x36f   : > { %p26_p12 = scmp.ge.s32.totalorder %s1908_s28, 4  }
 0x370   : > { %s1912_s26 = smov %s1909_s20 }
 0x371   :  { %28 = sbr.rel (!%p26_p12) target bundleno = 9 (0x9), region = 128 }
 0x376   :  { %964 = vsyncpa [#allocation3], 1 }
 0x377   :  { %966 = vsyncpa [#allocation3 + $0x1], 1 }
 0x378   :  { %967 = vsyncpa [#allocation6], 1 }
 0x379   :  { %968 = vsyncpa [#allocation9], 1 }
 0x37a   :  { %969 = vsyncpa [#allocation4], 1 }
 0x37b   :  { %971 = vsyncpa [#allocation4 + $0x1], 1 }

// kernel: tpu_custom_call.1
= control target key start
LH: loop header
LB: loop body
LE: loop exit
PB: predicated region body
PF: predicated region fallthrough
CT: control target
= control target key end

     0   :  { %s1867_s0 = inlined_call_operand.vmem [shape: bf16[16,6], index: 0, kind: input, shape index: {}]   ;;  %s1868_s1 = inlined_call_operand.hbm [shape: bf16[6,64], index: 1, kind: input, shape index: {}]   ;;  %s1869_s2 = inlined_call_operand.hbm [shape: f32[1,64], index: 2, kind: input, shape index: {}]   ;;  %s1870_s3 = inlined_call_operand.vmem [shape: bf16[64,128], index: 3, kind: input, shape index: {}]   ;;  %s1871_s4 = inlined_call_operand.hbm [shape: f32[1,128], index: 4, kind: input, shape index: {}]   ;;  %s1872_s5 = inlined_call_operand.vmem [shape: bf16[128,128], index: 5, kind: input, shape index: {}]   ;;  %s1873_s6 = inlined_call_operand.vmem [shape: f32[1,128], index: 6, kind: input, shape index: {}]   ;;  %s1874_s7 = inlined_call_operand.hbm [shape: bf16[128,128], index: 7, kind: input, shape index: {}]   ;;  %s1875_s8 = inlined_call_operand.vmem [shape: f32[1,128], index: 8, kind: input, shape index: {}]   ;;  %s1876_s9 = inlined_call_operand.hbm [shape: bf16[128,128], index: 9, kind: input, shape index: {}]   ;;  %s1877_s10 = inlined_call_operand.vmem [shape: f32[1,128], index: 10, kind: input, shape index: {}]   ;;  %s1878_s11 = inlined_call_operand.vmem [shape: bf16[128,32], index: 11, kind: input, shape index: {}]   ;;  %s1879_s12 = inlined_call_operand.vmem [shape: f32[1,32], index: 12, kind: input, shape index: {}]   ;;  %s1880_s13 = inlined_call_operand.hbm [shape: f32[16,32], index: 13, kind: output, shape index: {}]  }
   0x1   :  { %1889 = sst [smem:[#allocation23_spill]] %s1869_s2 }
   0x2   :  { %1890 = sst [smem:[#allocation24_spill]] %s1874_s7 }
   0x3   :  { %18 = vsyncpa [#allocation3], 0 }
   0x4   :  { %19 = vsyncpa [#allocation6], 0 }
   0x5   :  { %20 = vsyncpa [#allocation9], 0 }
   0x6   :  { %21 = vsyncpa [#allocation4], 0 }
   0x7   :  { %23 = vsyncpa [#allocation4 + $0x1], 0  ;;  %s1658_s25 = smov 0   ;;  %s1660_s26 = smov 0  }
   0x8   :  { %s1662_s27 = smov 0   ;;  %s1664_s28 = smov 0  }
   0x9 LB: > { %1891 = sst [smem:[#allocation16_spill]] %s1567_s25  ;;  %s1679_s29 = sadd.s32 4294967295, %s1579_s28   ;;  %s1579_s28 = sphi %s1664_s28, %s1908_s28   ;;  %s1575_s27 = sphi %s1662_s27, %s1910_s27   ;;  %s1571_s26 = sphi %s1660_s26, %s1912_s26   ;;  %s1567_s25 = sphi %s1658_s25, %s1911_s25  }
   0xa   : > { %1892 = sst [smem:[#allocation17_spill]] %s1575_s27  ;;  %s1055_s30 = sadd.s32 4294967294, %s1579_s28  }
   0xb   : > { %1893 = sst [smem:[#allocation18_spill]] %s1579_s28  ;;  %s1683_s14 = sadd.s32 1, %s1579_s28  }
   0xc   : > { %1894 = sst [smem:[#allocation19_spill]] %s1683_s14  ;;  %s314_s15 = sadd.s32 1, %s1575_s27 }
   0xd   : > { %s311_s16 = ssub.s32 %s1579_s28, %s1683_s14  ;;  %p324_p0 = scmp.ne.s32.totalorder %s1575_s27, %s1571_s26 }
   0xe   : > { %p312_p1 = scmp.eq.s32.totalorder %s311_s16, 0  ;;  %p325_p2 = scmp.eq.s32.totalorder %s1679_s29, 1 }
   0xf   : > { %p330_p3 = scmp.ne.s32.totalorder %s1571_s26, %s1567_s25  ;;  %p331_p4 = scmp.eq.s32.totalorder %s1055_s30, 1 }
  0x10   : > { %s1694_s17 = scalar_select %p312_p1, %s1575_s27, %s314_s15  }
  0x11   : > { %p1696_p5 = por %p325_p2, %p324_p0  ;;  %p1700_p6 = por %p331_p4, %p330_p3 }
  0x12   : > { %1895 = sst [smem:[#allocation20_spill]] %s1694_s17  ;;  %p1056_p7 = scmp.ge.s32.totalorder %s1579_s28, 1 }
  0x13   : > { %s1896_s18 = scalar_select %p1696_p5, 1, 0 }
  0x14   : > { %s1898_s19 = scalar_select %p1700_p6, 1, 0 }
  0x15   : > { %1897 = sst [smem:[#allocation21_spill]] %s1896_s18  ;;  %p338_p8 = scmp.lt.s32.totalorder %s1579_s28, 3 }
  0x16   : > { %1899 = sst [smem:[#allocation22_spill]] %s1898_s19  ;;  %p1299_p9 = scmp.eq.s32.totalorder %s1679_s29, 0 }
  0x17   : > { %p1707_p10 = pnand %p1056_p7, %p338_p8  ;;  %s1901_s2 = sld [smem:[#allocation23_spill]] }
  0x18   : > { %s1581_s24 = smov [#allocation5]   ;;  %s1902_s7 = sld [smem:[#allocation24_spill]] }
  0x19   : > { %p1279_p11 = pneg %p1707_p10  ;;  %s364_s30 = sshll.u32 %s1581_s24, 4  ;;  %s365_s30 = int_to_ptr.vmem [resolvable:$true] %s364_s30 }
  0x1a   : > { %s1582_s21 = smov [#allocation8]   ;;  %s1583_s24 = smov 64  }
  0x1b   : > { %p1721_p12 = pnand %p1299_p9, %p1279_p11  ;;  %s396_s22 = sshll.u32 %s1582_s21, 4  ;;  %s397_s22 = int_to_ptr.vmem [resolvable:$true] %s396_s22 }
  0x1c   : > { %s1585_s14 = smov [#allocation2]   ;;  %s377_s21 = sshll.u32 %s1871_s4, 4  ;;  %s378_s21 = int_to_ptr.hbm [resolvable:$true] %s377_s21 }
  0x1d   : > { %s362_s23 = sshll.u32 %s1901_s2, 4  ;;  %s1584_s2 = smov 4   ;;  %s363_s23 = int_to_ptr.hbm [resolvable:$true] %s362_s23 }
  0x1e   : > { %s394_s17 = sshll.u32 %s1902_s7, 4  ;;  %s350_s7 = sshll.u32 %s1868_s1, 4  ;;  %s395_s17 = int_to_ptr.hbm [resolvable:$true] %s394_s17  ;;  %s351_s7 = int_to_ptr.hbm [resolvable:$true] %s350_s7 }
  0x1f   : > { %1285 = dma.hbm_to_vmem [thread:$0]  (!%p1721_p12), %s363_s23, 16, %s365_s30, [#allocation6]  }
  0x20   : > { %1291 = dma.hbm_to_vmem [thread:$0]  (!%p1721_p12), %s395_s17, 1024, %s397_s22, [#allocation9], %s1583_s24, %s1583_s24, %s1584_s2  }
  0x21   : > { %s352_s19 = sshll.u32 %s1585_s14, 4  ;;  %s1586_s23 = smov [#allocation7]   ;;  %s353_s19 = int_to_ptr.vmem [resolvable:$true] %s352_s19 }
  0x22   : > { %1282 = dma.hbm_to_vmem [thread:$0]  (!%p1721_p12), %s351_s7, 64, %s353_s19, [#allocation3]  }
  0x23   : > { %s379_s30 = sshll.u32 %s1586_s23, 4  ;;  %s411_s22 = sshll.u32 %s1876_s9, 4  ;;  %s380_s30 = int_to_ptr.vmem [resolvable:$true] %s379_s30  ;;  %s412_s22 = int_to_ptr.hbm [resolvable:$true] %s411_s22 }
  0x24   : > { %1288 = dma.hbm_to_vmem [thread:$0]  (!%p1721_p12), %s378_s21, 16, %s380_s30, [#allocation6]  }
  0x25   : > { %s1587_s15 = smov [#allocation10]   ;;  %445 = sbr.rel (%p1707_p10) target bundleno = 860 (0x35c), region = 72 }
  0x26   : > { %s413_s14 = sshll.u32 %s1587_s15, 4  ;;  %s414_s14 = int_to_ptr.vmem [resolvable:$true] %s413_s14 }
  0x27   : > { %1294 = dma.hbm_to_vmem [thread:$0]  (!%p1721_p12), %s412_s22, 1024, %s414_s14, [#allocation9], %s1583_s24, %s1583_s24, %s1584_s2  }
  0x2a   : > { %1550 = dma.done.wait (%p1299_p9), [#allocation3], 64  }
  0x2b   : > { %1552 = vsyncadd (%p1299_p9), [#allocation3], 4294967232 }
  0x2c   : > { %1554 = dma.done.wait (%p1299_p9), [#allocation6], 32  }
  0x2d   : > { %1556 = vsyncadd (%p1299_p9), [#allocation6], 4294967264 }
  0x2e   : > { %1558 = dma.done.wait (%p1299_p9), [#allocation9], 2048  }
  0x2f   : > { %1560 = vsyncadd (%p1299_p9), [#allocation9], 4294965248  ;;  %p509_p13 = scmp.lt.s32.totalorder %s1679_s29, 1  ;;  %vm524_vm0 = vcmask 1042432   ;;  %v515_v0 = vld [vmem:[#allocation2] sm:$0x7] }
  0x30   : > { %vm520_vm1 = vcmask 48128   ;;  %v1224_v1 = vld [vmem:[%s1870_s3 + $0x18] sm:$0xff]  ;;  %v526_v2 = vsel %vm524_vm0, %v515_v0, 0  ;;  %v1223_v4 = vld [vmem:[%s1870_s3 + $0x10] sm:$0xff]  ;;  %v1222_v5 = vld [vmem:[%s1870_s3 + $0x8] sm:$0xff]  ;;  %vm579_vm2 = vcmask 523264  }
  0x31   : > { %s510_s2 = scalar_select %p509_p13, %s1679_s29, 1  ;;  %535 = vmatpush.bf16.msra.mxu0 %v526_v2  ;;  %587 = vmatpush.bf16.msra.mxu1 %v1224_v1  ;;  %v1221_v6 = vld [vmem:[%s1870_s3] sm:$0xff]  ;;  %v1232_v7 = vld [vmem:[%s1872_s5 + $0x38] sm:$0xff]  ;;  %v1231_v8 = vld [vmem:[%s1872_s5 + $0x30] sm:$0xff]  ;;  %vm928_vm3 = vcmask 261120  }
  0x32   : > { %666 = vmatpush.bf16.msra.mxu2 %v1232_v7  ;;  %v1230_v9 = vld [vmem:[%s1872_s5 + $0x28] sm:$0xff]  ;;  %v1229_v10 = vld [vmem:[%s1872_s5 + $0x20] sm:$0xff]  ;;  %v1228_v11 = vld [vmem:[%s1872_s5 + $0x18] sm:$0xff]  ;;  %s1525_s14 = scalar_lea.hbm %s1880_s13, 16 }
  0x33   : > { %s1070_s7 = sshll.u32 %s510_s2, 2  ;;  %v1227_v12 = vld [vmem:[%s1872_s5 + $0x10] sm:$0xff]  ;;  %v1349_v13 = vld [vmem:[#allocation5] ss:$0 sm:$0xff]  ;;  %v1226_v19 = vld [vmem:[%s1872_s5 + $0x8] sm:$0xff]  ;;  %s506_s2 = sand.u32 1, %s1571_s26  }
  0x34   : > { %s512_s28 = scalar_lea.vmem %s1867_s0, %s1070_s7  ;;  %v1225_v20 = vld [vmem:[%s1872_s5] sm:$0xff]  ;;  %v1239_v22 = vld [vmem:[#allocation8 + $0x30] sm:$0xff]  ;;  %v1238_v23 = vld [vmem:[#allocation8 + $0x28] sm:$0xff]  ;;  %s1218_s7 = sshll.u32 %s1679_s29, 3 }
  0x35   : > { %v514_v3 = vld [vmem:[%s512_s28] sm:$0xf]  ;;  %588 = vmatpush.bf16.msra.mxu1 %v1223_v4  ;;  %v1237_v24 = vld [vmem:[#allocation8 + $0x20] sm:$0xff]  ;;  %v1235_v26 = vld [vmem:[#allocation8 + $0x10] sm:$0xff]  ;;  %s1069_s25 = sshll.u32 %s506_s2, 3  ;;  %s941_s18 = scalar_lea.hbm %s1880_s13, %s1218_s7 }
  0x36   : > { %1071 = vmatmul.msk.bf16.vlgmr.msra.gmra.mxu0 %vm520_vm1, %v514_v3  ;;  %667 = vmatpush.bf16.msra.mxu2 %v1231_v8  ;;  %v1240_v21 = vld [vmem:[#allocation8 + $0x38] sm:$0xff]  ;;  %v1234_v33 = vld [vmem:[#allocation8 + $0x8] sm:$0xff]  ;;  %v1233_v34 = vld [vmem:[#allocation8] sm:$0xff]  ;;  %s508_s16 = scalar_lea.vmem [#allocation11], %s1069_s25  ;;  %s945_s23 = sshll.u32 %s941_s18, 4  ;;  %s946_s23 = int_to_ptr.hbm [resolvable:$true] %s945_s23 }
  0x37   : > { %749 = vmatpush.bf16.msra.mxu3 %v1240_v21  ;;  %v1236_v25 = vld [vmem:[#allocation8 + $0x18] sm:$0xff]  ;;  %v1247_v36 = vld [vmem:[#allocation10 + $0x30] sm:$0xff]  ;;  %v1246_v37 = vld [vmem:[#allocation10 + $0x28] sm:$0xff]  ;;  %s943_s21 = sshll.u32 %s508_s16, 4  ;;  %s931_s29 = scalar_lea.sflag [#allocation4], %s506_s2  ;;  %s944_s21 = int_to_ptr.vmem [resolvable:$true] %s943_s21 }
  0x38   : > { %v1350_v27 = vld [vmem:[#allocation7] ss:$0 sm:$0xff]  ;;  %v1245_v38 = vld [vmem:[#allocation10 + $0x20] sm:$0xff]  ;;  %v1243_v40 = vld [vmem:[#allocation10 + $0x10] sm:$0xff]  ;;  %s1519_s30 = sshra.s32 %s946_s23, 4  ;;  %s1520_s30 = int_to_ptr.hbm [resolvable:$true] %s1519_s30 }
  0x39   : > { %589 = vmatpush.bf16.msra.mxu1 %v1222_v5  ;;  %v1248_v35 = vld [vmem:[#allocation10 + $0x38] sm:$0xff]  ;;  %v1242_v47 = vld [vmem:[#allocation10 + $0x8] sm:$0xff]  ;;  %v1241_v48 = vld [vmem:[#allocation10] sm:$0xff]  ;;  %s1521_s17 = scalar_lea.hbm %s1520_s30, 8  ;;  %p1526_p3 = scmp.lt.s32.totalorder %s1520_s30, %s1880_s13 }
  0x3a   : > { %668 = vmatpush.bf16.msra.mxu2 %v1230_v9  ;;  %832 = vmatpush.bf16.msrb.mxu0 %v1248_v35  ;;  %v1244_v39 = vld [vmem:[#allocation10 + $0x18] sm:$0xff]  ;;  %v1256_v49 = vld [vmem:[%s1878_s11 + $0x38] sm:$0xff]  ;;  %v1255_v50 = vld [vmem:[%s1878_s11 + $0x30] sm:$0xff]  ;;  %p1522_p0 = scmp.ne.s32.totalorder %s1520_s30, %s1521_s17  ;;  %p1527_p4 = scmp.lt.s32.totalorder %s1525_s14, %s1521_s17 }
  0x3b   : > { %750 = vmatpush.bf16.msra.mxu3 %v1239_v22  ;;  %v1351_v41 = vld [vmem:[%s1873_s6] ss:$0 sm:$0xff]  ;;  %v1254_v51 = vld [vmem:[%s1878_s11 + $0x28] sm:$0xff]  ;;  %v1252_v53 = vld [vmem:[%s1878_s11 + $0x18] sm:$0xff] }
  0x3c   : > { %v1253_v52 = vld [vmem:[%s1878_s11 + $0x20] sm:$0xff]  ;;  %v1251_v54 = vld [vmem:[%s1878_s11 + $0x10] sm:$0xff]  ;;  %v1250_v61 = vld [vmem:[%s1878_s11 + $0x8] sm:$0xff]  ;;  %p1523_p1 = pnand %p1522_p0, %p1696_p5  ;;  %p1528_p7 = por %p1527_p4, %p1526_p3 }
  0x3d   : > { %590 = vmatpush.bf16.msra.mxu1 %v1221_v6  ;;  %v1352_v55 = vld [vmem:[%s1875_s8] ss:$0 sm:$0xff] }
  0x3e   : > { %669 = vmatpush.bf16.msra.mxu2 %v1229_v10  ;;  %833 = vmatpush.bf16.msrb.mxu0 %v1247_v36  ;;  %v1249_v62 = vld [vmem:[%s1878_s11] sm:$0xff]  ;;  %p1524_p2 = pneg %p1523_p1 }
  0x3f   : > { %751 = vmatpush.bf16.msra.mxu3 %v1238_v23  ;;  %v1353_v63 = vld [vmem:[%s1877_s10] ss:$0 sm:$0xff] }
  0x40   : > { %v1354_v5 = vld [vmem:[%s1879_s12] ss:$0 sm:$0xff]  ;;  %p1529_p8 = pnand %p1528_p7, %p1524_p2 }
  0x41   : > { %915 = vmatpush.bf16.msrb.mxu1 %v1256_v49 }
  0x42   : > { %670 = vmatpush.bf16.msra.mxu2 %v1228_v11  ;;  %834 = vmatpush.bf16.msrb.mxu0 %v1246_v37 }
  0x43   : > { %752 = vmatpush.bf16.msra.mxu3 %v1237_v24 }
  0x45   : > { %916 = vmatpush.bf16.msrb.mxu1 %v1255_v50 }
  0x46   : > { %671 = vmatpush.bf16.msra.mxu2 %v1227_v12  ;;  %835 = vmatpush.bf16.msrb.mxu0 %v1245_v38 }
  0x47   : > { %753 = vmatpush.bf16.msra.mxu3 %v1236_v25 }
  0x49   : > { %917 = vmatpush.bf16.msrb.mxu1 %v1254_v51 }
  0x4a   : > { %672 = vmatpush.bf16.msra.mxu2 %v1226_v19  ;;  %836 = vmatpush.bf16.msrb.mxu0 %v1244_v39 }
  0x4b   : > { %754 = vmatpush.bf16.msra.mxu3 %v1235_v26 }
  0x4d   : > { %918 = vmatpush.bf16.msrb.mxu1 %v1253_v52 }
  0x4e   : > { %673 = vmatpush.bf16.msra.mxu2 %v1225_v20  ;;  %837 = vmatpush.bf16.msrb.mxu0 %v1243_v40 }
  0x4f   : > { %755 = vmatpush.bf16.msra.mxu3 %v1234_v33 }
  0x51   : > { %919 = vmatpush.bf16.msrb.mxu1 %v1252_v53 }
  0x52   : > { %838 = vmatpush.bf16.msrb.mxu0 %v1242_v47 }
  0x53   : > { %756 = vmatpush.bf16.msra.mxu3 %v1233_v34 }
  0x55   : > { %920 = vmatpush.bf16.msrb.mxu1 %v1251_v54 }
  0x56   : > { %839 = vmatpush.bf16.msrb.mxu0 %v1241_v48 }
  0x59   : > { %921 = vmatpush.bf16.msrb.mxu1 %v1250_v61 }
  0x5d   : > { %922 = vmatpush.bf16.msrb.mxu1 %v1249_v62 }
  0xb3   : > { %v537_v14 = vpop.f32.mrf.mxu0 }
  0xb4   : > { %v538_v15 = vadd.f32 %v1349_v13, %v537_v14 }
  0xb6   : > { %v541_v16 = vmax.f32 %v538_v15, 0.0 }
  0xb8   : > { %v542_v17 = vpack.c.bf16 %v541_v16, %v541_v16 }
  0xba   : > { %1088 = vmatmul.msk.bf16.vlgmr.msra.gmra.mxu1 %vm579_vm2, %v542_v17 }
  0xbb   : > { %v539_v18 = vpop.f32.mrf.mxu0 }
 0x137   : > { %v592_v28 = vpop.f32.mrf.mxu1 }
 0x138   : > { %v593_v29 = vadd.f32 %v1350_v27, %v592_v28 }
 0x13a   : > { %v596_v30 = vmax.f32 %v593_v29, 0.0 }
 0x13c   : > { %v597_v31 = vpack.c.bf16 %v596_v30, %v596_v30 }
 0x13e   : > { %674 = vmatmul.bf16.vlgmr.msra.gmra.mxu2 %v597_v31 }
 0x13f   : > { %v594_v32 = vpop.f32.mrf.mxu1 }
 0x1c1   : > { %v675_v42 = vpop.f32.mrf.mxu2 }
 0x1c2   : > { %v676_v43 = vadd.f32 %v1351_v41, %v675_v42 }
 0x1c4   : > { %v679_v44 = vmax.f32 %v676_v43, 0.0 }
 0x1c6   : > { %v680_v45 = vpack.c.bf16 %v679_v44, %v679_v44 }
 0x1c8   : > { %757 = vmatmul.bf16.vlgmr.msra.gmra.mxu3 %v680_v45 }
 0x1c9   : > { %v677_v46 = vpop.f32.mrf.mxu2 }
 0x24b   : > { %v758_v56 = vpop.f32.mrf.mxu3 }
 0x24c   : > { %v759_v57 = vadd.f32 %v1352_v55, %v758_v56 }
 0x24e   : > { %v762_v58 = vmax.f32 %v759_v57, 0.0 }
 0x250   : > { %v763_v59 = vpack.c.bf16 %v762_v58, %v762_v58 }
 0x252   : > { %840 = vmatmul.bf16.vlgmr.msrb.gmra.mxu0 %v763_v59 }
 0x253   : > { %v760_v60 = vpop.f32.mrf.mxu3 }
 0x2cf   : > { %v841_v0 = vpop.f32.mrf.mxu0 }
 0x2d0   : > { %v842_v1 = vadd.f32 %v1353_v63, %v841_v0 }
 0x2d2   : > { %v845_v2 = vmax.f32 %v842_v1, 0.0 }
 0x2d4   : > { %v846_v3 = vpack.c.bf16 %v845_v2, %v845_v2 }
 0x2d6   : > { %923 = vmatmul.bf16.vlgmr.msrb.gmra.mxu1 %v846_v3 }
 0x2d7   : > { %v843_v4 = vpop.f32.mrf.mxu0 }
 0x353   : > { %v924_v6 = vpop.f32.mrf.mxu1 }
 0x354   : > { %v925_v7 = vadd.f32 %v1354_v5, %v924_v6 }
 0x356   : > { %929 = vst.msk [vmem:[%s508_s16] sm:$0xff] %vm928_vm3, %v925_v7 }
 0x357   : > { %1532 = shalt.err (!%p1529_p8)
}
 0x358   : > { %1277 = dma.vmem_to_hbm [thread:$0]  (%p1696_p5), %s944_s21, 128, %s946_s23, %s931_s29  }
 0x35b   : > { %v926_v8 = vpop.f32.mrf.mxu1 }
 0x35c PF: > { %s1905_s2 = sld [smem:[#allocation18_spill]] }
 0x35d   : > { %s1906_s27 = sld [smem:[#allocation16_spill]] }
 0x362   : > { %p1309_p9 = scmp.ge.s32.totalorder %s1905_s2, 2 }
 0x363   : > { %s957_s18 = sand.u32 1, %s1906_s27  }
 0x364   : > { %p1296_p10 = pnand %p1309_p9, %p1700_p6  ;;  %s958_s19 = scalar_lea.sflag [#allocation4], %s957_s18 }
 0x366   : > { %p1297_p11 = pneg %p1296_p10 }
 0x368   : > { %1562 = dma.done.wait (%p1297_p11), %s958_s19, 128  }
 0x369   : > { %1564 = vsyncadd (%p1297_p11), %s958_s19, 4294967168  ;;  %s1908_s28 = sld [smem:[#allocation19_spill]]  ;;  %s1911_s25 = smov %s1571_s26 }
 0x36a   : > { %s1909_s20 = sld [smem:[#allocation17_spill]] }
 0x36b   : > { %s1910_s27 = sld [smem:[#allocation20_spill]] }
 0x36f   : > { %p26_p12 = scmp.ge.s32.totalorder %s1908_s28, 4  }
 0x370   : > { %s1912_s26 = smov %s1909_s20 }
 0x371   :  { %28 = sbr.rel (!%p26_p12) target bundleno = 9 (0x9), region = 128 }
 0x376   :  { %964 = vsyncpa [#allocation3], 1 }
 0x377   :  { %966 = vsyncpa [#allocation3 + $0x1], 1 }
 0x378   :  { %967 = vsyncpa [#allocation6], 1 }
 0x379   :  { %968 = vsyncpa [#allocation9], 1 }
 0x37a   :  { %969 = vsyncpa [#allocation4], 1 }
 0x37b   :  { %971 = vsyncpa [#allocation4 + $0x1], 1 }

</bundles_post_ra>
